<compile_context>
chip_gen: v7x
topology: tpu7x:2x2x1
jax: 0.10.0
libtpu: 0.0.40
codegen_flags: <defaults>
</compile_context>

<pallas_src>
import jax
import jax.numpy as jnp
from jax.experimental import pallas as pl
from jax.experimental.pallas import tpu as pltpu

IN_EPS = 1e-3   # InstanceNorm2d eps
BN_EPS = 1e-5   # BatchNorm2d eps


# --------------------------------------------------------------------------- #
# Kernel
# --------------------------------------------------------------------------- #
def diffpool_kernel(x_ref, scale_ref, shift_ref, w_ref, out_ref):
    # x_ref:   (Bt, C, N)  f32   input slab (Bt batches resident per grid step)
    # scale:   (C, 1)      f32   folded eval-mode BN scale
    # shift:   (C, 1)      f32   folded eval-mode BN shift
    # w_ref:   (P, C)      f32   1x1 conv weight
    # out_ref: (Bt, P, C)  f32   pooled output, lane-dense along C
    x = x_ref[...]                                           # (Bt, C, N)
    scale = scale_ref[...]                                   # (C, 1) -> broadcasts
    shift = shift_ref[...]
    bt = x_ref.shape[0]

    # InstanceNorm2d (biased variance) with the folded-BN scale fused into the
    # rsqrt factor, then shift + ReLU.  All reductions are over the lane axis N.
    mean = jnp.mean(x, axis=-1, keepdims=True)               # (Bt, C, 1)
    xc = x - mean
    var = jnp.mean(xc * xc, axis=-1, keepdims=True)          # (Bt, C, 1)
    y = jnp.maximum(xc * (jax.lax.rsqrt(var + IN_EPS) * scale) + shift, 0.0)

    # 1x1 conv on the MXU: batched (Bt,P,C) @ (Bt,C,N) -> (Bt,P,N), bf16
    # operands / f32 accumulate, both operands in MXU-native form.
    # Conv bias omitted: softmax over N cancels a per-(b,p) constant exactly.
    w_b = jnp.broadcast_to(w_ref[...].astype(jnp.bfloat16),
                           (bt,) + w_ref.shape)              # (Bt, P, C)
    embed = jax.lax.dot_general(
        w_b, y.astype(jnp.bfloat16),
        dimension_numbers=(((2,), (1,)), ((0,), (0,))),
        preferred_element_type=jnp.float32)                  # (Bt, P, N)

    # Softmax over N (dim=2 of the original NCHW tensor); EUP approximate
    # reciprocal keeps the divide off the VALU.
    m = jnp.max(embed, axis=-1, keepdims=True)
    e = jnp.exp(embed - m)
    s = e * pl.reciprocal(jnp.sum(e, axis=-1, keepdims=True), approx=True)

    # pooled[b] = s[b] @ x[b]^T  -> (Bt, P, C), contraction over N expressed as
    # the standard batched last-last contraction (flash-attention q@k^T form).
    # Output last dim is C -> lane-dense stores.
    out_ref[...] = jax.lax.dot_general(
        s.astype(jnp.bfloat16), x.astype(jnp.bfloat16),
        dimension_numbers=(((2,), (2,)), ((0,), (0,))),
        preferred_element_type=jnp.float32)                  # (Bt, P, C)


# --------------------------------------------------------------------------- #
# Generation-aware block / VMEM policy
# --------------------------------------------------------------------------- #
def _tpu_generation():
    try:
        kind = jax.devices()[0].device_kind.lower()
    except Exception:
        kind = ""
    if "v7" in kind:
        return "v7x"
    if "v6" in kind:
        return "v6e"
    if "v5" in kind:
        return "v5e"
    return "unknown"


def _vmem_capacity_bytes(gen):
    if gen in ("v5e", "v6e"):
        return 128 * 1024 * 1024
    # v7x has 64 MiB per TensorCore; also the conservative default.
    return 64 * 1024 * 1024


def _num_tensorcores(gen):
    return 2 if gen == "v7x" else 1


def _block_bytes(bt, C, N, P):
    # Double-buffered x input slab + double-buffered (P,C) output slab +
    # resident weight/scale/shift (constant index_map -> single copy).
    return (2 * bt * C * N * 4) + (2 * bt * P * C * 4) + (P * C * 4) + (2 * C * 4)


def _pick_block_b(B, C, N, P):
    gen = _tpu_generation()
    budget = int(0.45 * _vmem_capacity_bytes(gen))   # headroom under scoped limit
    fits = [d for d in range(1, B + 1)
            if B % d == 0 and _block_bytes(d, C, N, P) <= budget]
    if not fits:
        fits = [1]
    if _num_tensorcores(gen) >= 2:
        # v7x: both TensorCores share the parallel grid axis -> keep grid_b even
        # and preferably >= 4 (>= 2 pipelined steps per core).
        good = [d for d in fits if (B // d) % 2 == 0 and (B // d) >= 4]
        if good:
            return max(good)
        even = [d for d in fits if (B // d) % 2 == 0]
        if even:
            return max(even)
        return max(fits)
    # v5e / v6e: single TensorCore -> the parallel grid axis is a serial loop;
    # take the largest resident slab that fits (extra steps are pure overhead).
    return max(fits)


def _vmem_limit_bytes(bt, C, N, P):
    gen = _tpu_generation()
    need = _block_bytes(bt, C, N, P) + (4 << 20)      # slack for layout/scratch
    cap = _vmem_capacity_bytes(gen)
    return int(min(max(need, 32 * 1024 * 1024), int(0.75 * cap)))


# --------------------------------------------------------------------------- #
# Wrapper
# --------------------------------------------------------------------------- #
def diffpool_forward(x_nchw, gamma, beta, running_mean, running_var,
                     conv_w, conv_b, *, block_b=None):
    """x_nchw: (B, C, N, 1) float32. Returns (B, C, P, 1) float32."""
    B, C, N, W = x_nchw.shape
    assert W == 1, "DiffPool expects trailing spatial dim of size 1"
    P = conv_w.shape[0]
    # Softmax is over the N axis, so the per-(p) conv bias is constant along the
    # softmax axis and cancels exactly -> dropped inside the kernel.
    del conv_b

    x = x_nchw[..., 0].astype(jnp.float32)                     # (B, C, N)

    # Fold eval-mode BatchNorm into per-channel scale/shift.
    bn_scale = gamma.astype(jnp.float32) * jax.lax.rsqrt(
        running_var.astype(jnp.float32) + BN_EPS)
    bn_shift = beta.astype(jnp.float32) - running_mean.astype(jnp.float32) * bn_scale
    scale2d = bn_scale.reshape(C, 1)
    shift2d = bn_shift.reshape(C, 1)
    w2d = conv_w.reshape(P, C).astype(jnp.float32)              # (P,C,1,1) -> (P,C)

    if block_b is None:
        block_b = _pick_block_b(B, C, N, P)
    assert B % block_b == 0, (B, block_b)
    grid_b = B // block_b

    out_pc = pl.pallas_call(
        diffpool_kernel,
        out_shape=jax.ShapeDtypeStruct((B, P, C), jnp.float32),
        grid_spec=pltpu.PrefetchScalarGridSpec(
            num_scalar_prefetch=0,
            grid=(grid_b,),
            in_specs=[
                pl.BlockSpec((block_b, C, N), lambda b: (b, 0, 0)),  # x slab
                pl.BlockSpec((C, 1), lambda b: (0, 0)),              # BN scale
                pl.BlockSpec((C, 1), lambda b: (0, 0)),              # BN shift
                pl.BlockSpec((P, C), lambda b: (0, 0)),              # conv weight
            ],
            out_specs=pl.BlockSpec((block_b, P, C), lambda b: (b, 0, 0)),
        ),
        compiler_params=pltpu.CompilerParams(
            dimension_semantics=("parallel",),
            vmem_limit_bytes=_vmem_limit_bytes(block_b, C, N, P),
        ),
    )(x, scale2d, shift2d, w2d)

    # Kernel emits (B, P, C) for lane-dense stores; restore the PyTorch layout
    # (B, C, P, 1) with a cheap XLA transpose outside the kernel.
    return jnp.transpose(out_pc, (0, 2, 1))[..., None]


# --------------------------------------------------------------------------- #
# Pure-JAX reference (eval mode, bias included)
# --------------------------------------------------------------------------- #
def diffpool_reference(x_nchw, gamma, beta, running_mean, running_var, conv_w, conv_b):
    B, C, N, _ = x_nchw.shape
    P = conv_w.shape[0]
    x = x_nchw[..., 0]                                          # (B, C, N)
    mean = jnp.mean(x, axis=2, keepdims=True)
    var = jnp.mean((x - mean) ** 2, axis=2, keepdims=True)
    xn = (x - mean) / jnp.sqrt(var + IN_EPS)
    bn = (xn - running_mean[None, :, None]) / jnp.sqrt(running_var[None, :, None] + BN_EPS)
    bn = bn * gamma[None, :, None] + beta[None, :, None]
    y = jnp.maximum(bn, 0.0)
    w2d = conv_w.reshape(P, C)
    embed = jnp.einsum("pc,bcn->bpn", w2d, y) + conv_b[None, :, None]
    s = jax.nn.softmax(embed, axis=2)                           # (B, P, N)
    out = jnp.einsum("bcn,bpn->bcp", x, s)
    return out[..., None]


if __name__ == "__main__":
    # Small shapes consistent with the module (B, C, N, 1) point-cloud layout.
    B, C, N, P = 4, 16, 64, 8

    key = jax.random.PRNGKey(0)
    kx, kg, kb, krm, krv, kw, kcb = jax.random.split(key, 7)

    x = jax.random.normal(kx, (B, C, N, 1), dtype=jnp.float32)

    # Deterministic synthetic parameters (shapes from the module's __init__).
    gamma = 1.0 + 0.1 * jax.random.normal(kg, (C,), dtype=jnp.float32)          # BN weight
    beta = 0.1 * jax.random.normal(kb, (C,), dtype=jnp.float32)                 # BN bias
    running_mean = 0.1 * jax.random.normal(krm, (C,), dtype=jnp.float32)        # BN running_mean
    running_var = 1.0 + 0.1 * jax.random.uniform(krv, (C,), dtype=jnp.float32)  # BN running_var
    conv_w = jax.random.normal(kw, (P, C, 1, 1), dtype=jnp.float32) * (1.0 / jnp.sqrt(C))
    conv_b = 0.05 * jax.random.normal(kcb, (P,), dtype=jnp.float32)

    out = diffpool_forward(x, gamma, beta, running_mean, running_var, conv_w, conv_b)
    out = jax.block_until_ready(out)

    ref = diffpool_reference(x, gamma, beta, running_mean, running_var, conv_w, conv_b)
    assert out.shape == (B, C, P, 1), out.shape
    # Tolerance accounts for bf16 MXU operands (f32 accumulation) and the EUP
    # approximate softmax reciprocal (~1e-3..5e-3 expected error); real bugs
    # would be orders of magnitude larger.
    assert jnp.allclose(out, ref, atol=2e-2, rtol=2e-2), \
        float(jnp.max(jnp.abs(out - ref)))

    print("KERNEL_OK")
</pallas_src>

<mosaic_0001>
module attributes {stable_mosaic.version = 11 : i64} {
  func.func @diffpool_kernel(%arg0: i32, %arg1: memref<4x16x64xf32, #tpu.memory_space<vmem>>, %arg2: memref<16x1xf32, #tpu.memory_space<vmem>>, %arg3: memref<16x1xf32, #tpu.memory_space<vmem>>, %arg4: memref<8x16xf32, #tpu.memory_space<vmem>>, %arg5: memref<4x8x16xf32, #tpu.memory_space<vmem>>) attributes {dimension_semantics = [#tpu.dimension_semantics<parallel>], iteration_bounds = array<i64: 1>, scalar_prefetch = 0 : i64, scratch_operands = 0 : i64, tpu.core_type = #tpu.core_type<tc>, window_params = [{transform_indices = @transform_0, window_bounds = array<i64: 4, 16, 64>}, {pipeline_mode = #tpu.pipeline_mode<synchronous>, transform_indices = @transform_1, window_bounds = array<i64: 16, 1>}, {pipeline_mode = #tpu.pipeline_mode<synchronous>, transform_indices = @transform_2, window_bounds = array<i64: 16, 1>}, {pipeline_mode = #tpu.pipeline_mode<synchronous>, transform_indices = @transform_3, window_bounds = array<i64: 8, 16>}, {transform_indices = @transform_4, window_bounds = array<i64: 4, 8, 16>}]} {
    %c0 = arith.constant 0 : index
    %c0_0 = arith.constant 0 : index
    %c0_1 = arith.constant 0 : index
    %0 = vector.load %arg1[%c0, %c0_0, %c0_1] : memref<4x16x64xf32, #tpu.memory_space<vmem>>, vector<4x16x64xf32>
    %c0_2 = arith.constant 0 : index
    %c0_3 = arith.constant 0 : index
    %1 = vector.load %arg2[%c0_2, %c0_3] : memref<16x1xf32, #tpu.memory_space<vmem>>, vector<16x1xf32>
    %c0_4 = arith.constant 0 : index
    %c0_5 = arith.constant 0 : index
    %2 = vector.load %arg3[%c0_4, %c0_5] : memref<16x1xf32, #tpu.memory_space<vmem>>, vector<16x1xf32>
    %cst = arith.constant dense<0.000000e+00> : vector<4x16xf32>
    %3 = vector.multi_reduction <add>, %0, %cst [2] : vector<4x16x64xf32> to vector<4x16xf32>
    %4 = vector.shape_cast %3 : vector<4x16xf32> to vector<4x16x1xf32>
    %cst_6 = arith.constant 6.400000e+01 : f32
    %5 = vector.broadcast %cst_6 : f32 to vector<4x16x1xf32>
    %6 = arith.divf %4, %5 : vector<4x16x1xf32>
    %7 = vector.broadcast %6 : vector<4x16x1xf32> to vector<4x16x64xf32>
    %8 = arith.subf %0, %7 : vector<4x16x64xf32>
    %9 = arith.mulf %8, %8 : vector<4x16x64xf32>
    %cst_7 = arith.constant dense<0.000000e+00> : vector<4x16xf32>
    %10 = vector.multi_reduction <add>, %9, %cst_7 [2] : vector<4x16x64xf32> to vector<4x16xf32>
    %11 = vector.shape_cast %10 : vector<4x16xf32> to vector<4x16x1xf32>
    %cst_8 = arith.constant 6.400000e+01 : f32
    %12 = vector.broadcast %cst_8 : f32 to vector<4x16x1xf32>
    %13 = arith.divf %11, %12 : vector<4x16x1xf32>
    %cst_9 = arith.constant 1.000000e-03 : f32
    %14 = vector.broadcast %cst_9 : f32 to vector<4x16x1xf32>
    %15 = arith.addf %13, %14 : vector<4x16x1xf32>
    %16 = math.rsqrt %15 : vector<4x16x1xf32>
    %17 = vector.shape_cast %1 : vector<16x1xf32> to vector<1x16x1xf32>
    %18 = vector.broadcast %17 : vector<1x16x1xf32> to vector<4x16x1xf32>
    %19 = arith.mulf %16, %18 : vector<4x16x1xf32>
    %20 = vector.broadcast %19 : vector<4x16x1xf32> to vector<4x16x64xf32>
    %21 = arith.mulf %8, %20 : vector<4x16x64xf32>
    %22 = vector.shape_cast %2 : vector<16x1xf32> to vector<1x16x1xf32>
    %23 = vector.broadcast %22 : vector<1x16x1xf32> to vector<4x16x64xf32>
    %24 = arith.addf %21, %23 : vector<4x16x64xf32>
    %cst_10 = arith.constant 0.000000e+00 : f32
    %25 = vector.broadcast %cst_10 : f32 to vector<4x16x64xf32>
    %26 = arith.maximumf %24, %25 : vector<4x16x64xf32>
    %c0_11 = arith.constant 0 : index
    %c0_12 = arith.constant 0 : index
    %27 = vector.load %arg4[%c0_11, %c0_12] : memref<8x16xf32, #tpu.memory_space<vmem>>, vector<8x16xf32>
    %28 = arith.truncf %27 : vector<8x16xf32> to vector<8x16xbf16>
    %29 = vector.shape_cast %28 : vector<8x16xbf16> to vector<1x8x16xbf16>
    %30 = vector.broadcast %29 : vector<1x8x16xbf16> to vector<4x8x16xbf16>
    %31 = arith.truncf %26 : vector<4x16x64xf32> to vector<4x16x64xbf16>
    %cst_13 = arith.constant dense<0.000000e+00> : vector<4x8x64xf32>
    %32 = tpu.matmul %30, %31, %cst_13 {dimension_numbers = #tpu.dot_dimension_numbers<[2], [1], [1], [2], [0, 0, 0, 1, 1, 2], [0], [0]>} : vector<4x8x16xbf16>, vector<4x16x64xbf16>, vector<4x8x64xf32> -> vector<4x8x64xf32>
    %cst_14 = arith.constant dense<0xFF800000> : vector<4x8xf32>
    %33 = vector.multi_reduction <maximumf>, %32, %cst_14 [2] : vector<4x8x64xf32> to vector<4x8xf32>
    %34 = vector.shape_cast %33 : vector<4x8xf32> to vector<4x8x1xf32>
    %35 = vector.broadcast %34 : vector<4x8x1xf32> to vector<4x8x64xf32>
    %36 = arith.subf %32, %35 : vector<4x8x64xf32>
    %37 = math.exp %36 : vector<4x8x64xf32>
    %cst_15 = arith.constant dense<0.000000e+00> : vector<4x8xf32>
    %38 = vector.multi_reduction <add>, %37, %cst_15 [2] : vector<4x8x64xf32> to vector<4x8xf32>
    %39 = vector.shape_cast %38 : vector<4x8xf32> to vector<4x8x1xf32>
    %40 = tpu.reciprocal %39 {approx = true} : vector<4x8x1xf32> -> vector<4x8x1xf32>
    %41 = vector.broadcast %40 : vector<4x8x1xf32> to vector<4x8x64xf32>
    %42 = arith.mulf %37, %41 : vector<4x8x64xf32>
    %43 = arith.truncf %42 : vector<4x8x64xf32> to vector<4x8x64xbf16>
    %44 = arith.truncf %0 : vector<4x16x64xf32> to vector<4x16x64xbf16>
    %cst_16 = arith.constant dense<0.000000e+00> : vector<4x8x16xf32>
    %45 = tpu.matmul %43, %44, %cst_16 {dimension_numbers = #tpu.dot_dimension_numbers<[2], [2], [1], [1], [0, 0, 0, 1, 1, 1], [0], [0]>} : vector<4x8x64xbf16>, vector<4x16x64xbf16>, vector<4x8x16xf32> -> vector<4x8x16xf32>
    %c0_17 = arith.constant 0 : index
    %c0_18 = arith.constant 0 : index
    %c0_19 = arith.constant 0 : index
    %46 = vector.load %arg5[%c0_17, %c0_18, %c0_19] : memref<4x8x16xf32, #tpu.memory_space<vmem>>, vector<4x8x16xf32>
    tpu.vector_store %arg5[%c0_17, %c0_18, %c0_19], %45 {strides = array<i32>} : memref<4x8x16xf32, #tpu.memory_space<vmem>>, vector<4x8x16xf32>,
    return
  }
  func.func @transform_0(%arg0: i32) -> (i32, i32, i32) {
    %c0_i32 = arith.constant 0 : i32
    %c0_i32_0 = arith.constant 0 : i32
    %c0_i32_1 = arith.constant 0 : i32
    return %arg0, %c0_i32, %c0_i32_0 : i32, i32, i32
  }
  func.func @transform_1(%arg0: i32) -> (i32, i32) {
    %c0_i32 = arith.constant 0 : i32
    %c0_i32_0 = arith.constant 0 : i32
    %c0_i32_1 = arith.constant 0 : i32
    return %c0_i32, %c0_i32_0 : i32, i32
  }
  func.func @transform_2(%arg0: i32) -> (i32, i32) {
    %c0_i32 = arith.constant 0 : i32
    %c0_i32_0 = arith.constant 0 : i32
    %c0_i32_1 = arith.constant 0 : i32
    return %c0_i32, %c0_i32_0 : i32, i32
  }
  func.func @transform_3(%arg0: i32) -> (i32, i32) {
    %c0_i32 = arith.constant 0 : i32
    %c0_i32_0 = arith.constant 0 : i32
    %c0_i32_1 = arith.constant 0 : i32
    return %c0_i32, %c0_i32_0 : i32, i32
  }
  func.func @transform_4(%arg0: i32) -> (i32, i32, i32) {
    %c0_i32 = arith.constant 0 : i32
    %c0_i32_0 = arith.constant 0 : i32
    %c0_i32_1 = arith.constant 0 : i32
    return %arg0, %c0_i32, %c0_i32_0 : i32, i32, i32
  }
}

</mosaic_0001>

<bundles_post_ra>
// kernel: tpu_custom_call.1
= control target key start
LH: loop header
LB: loop body
LE: loop exit
PB: predicated region body
PF: predicated region fallthrough
CT: control target
= control target key end

     0   :  { %9 = vsyncpa [#allocation3], 0  ;;  %s1034_s0 = inlined_call_operand.hbm [shape: f32[4,16,64], index: 0, kind: input, shape index: {}]   ;;  %s1035_s1 = inlined_call_operand.vmem [shape: f32[16,1], index: 1, kind: input, shape index: {}]   ;;  %s1036_s2 = inlined_call_operand.vmem [shape: f32[16,1], index: 2, kind: input, shape index: {}]   ;;  %s1037_s3 = inlined_call_operand.vmem [shape: f32[8,16], index: 3, kind: input, shape index: {}]   ;;  %s1038_s4 = inlined_call_operand.hbm [shape: f32[4,8,16], index: 4, kind: output, shape index: {}]  }
   0x1   :  { %10 = vsyncpa [#allocation4], 0  ;;  %s813_s15 = smov [#allocation2]   ;;  %s765_s19 = scalar_lea.hbm %s1034_s0, 1024 }
   0x2   :  { %s16_s16 = sshll.u32 %s813_s15, 4  ;;  %p766_p0 = scmp.ne.s32.totalorder %s1034_s0, %s765_s19  ;;  %s17_s16 = int_to_ptr.vmem [resolvable:$true] %s16_s16 }
   0x3   :  { %p769_p1 = scmp.lt.u32.totalorder %s765_s19, %s1034_s0 }
   0x5   :  { %p771_p2 = pnand %p769_p1, %p766_p0 }
   0x7   :  { %774 = shalt.err (!%p771_p2)
}
   0x8   :  { %s775_s24 = scalar_lea.vmem %s17_s16, 1024  ;;  %p780_p4 = scmp.lt.s32.totalorder %s17_s16, %s17_s16 }
   0x9   :  { %p776_p3 = scmp.ne.s32.totalorder %s17_s16, %s775_s24  ;;  %p781_p5 = scmp.lt.s32.totalorder %s775_s24, %s775_s24 }
   0xb   :  { %p782_p6 = por %p781_p5, %p780_p4 }
   0xd   :  { %p783_p7 = pnand %p782_p6, %p776_p3 }
   0xf   :  { %786 = shalt.err (!%p783_p7)
}
  0x10   :  { %s814_s25 = smov 128   ;;  %s815_s26 = smov 8  }
  0x11   :  { %22 = dma.hbm_to_vmem [thread:$0]  %s1034_s0, 1024, %s17_s16, [#allocation3], %s814_s25, %s814_s25, %s815_s26  }
  0x12   :  { %809 = dma.done.wait [#allocation3], 1024  }
  0x13   :  { %810 = vsyncadd [#allocation3], 4294966272  ;;  %vm45_vm0 = vcmask 523264   ;;  %v860_v0 = vld [vmem:[#allocation2] sm:$0xff]  ;;  %v862_v1 = vld [vmem:[#allocation2 + $0x10] sm:$0xff]  ;;  %v816_v56 = vmov 0  }
  0x14   :  { %v864_v2 = vld [vmem:[#allocation2 + $0x8] sm:$0xff]  ;;  %v46_v3 = vsel %vm45_vm0, %v860_v0, 0.0  ;;  %v52_v4 = vsel %vm45_vm0, %v862_v1, 0.0  ;;  %v870_v5 = vld [vmem:[#allocation2 + $0x18] sm:$0xff]  ;;  %v878_v9 = vld [vmem:[#allocation2 + $0x20] sm:$0xff]  ;;  %732 = vset.pattern.permute.xlu1 %v816_v56  ;;  %731 = vset.pattern.permute.xlu0 %v816_v56  ;;  %vm818_vm1 = vmmov 0  }
  0x15   :  { %47 = vadd.xlane.f32.xlu0 %v46_v3  ;;  %53 = vadd.xlane.f32.xlu1 %v52_v4  ;;  %v49_v6 = vsel %vm45_vm0, %v864_v2, 0.0  ;;  %v55_v7 = vsel %vm45_vm0, %v870_v5, 0.0  ;;  %v876_v8 = vld [vmem:[#allocation2 + $0x28] sm:$0xff]  ;;  %v58_v11 = vsel %vm45_vm0, %v878_v9, 0.0  ;;  %v884_v12 = vld [vmem:[#allocation2 + $0x38] sm:$0xff]  ;;  %v886_v13 = vld [vmem:[#allocation2 + $0x30] sm:$0xff] }
  0x16   :  { %v61_v10 = vsel %vm45_vm0, %v876_v8, 0.0  ;;  %v67_v14 = vsel %vm45_vm0, %v884_v12, 0.0  ;;  %v64_v15 = vsel %vm45_vm0, %v886_v13, 0.0  ;;  %v43_v57 = vld [vmem:[%s1036_s2] sm:$0xff]  ;;  %v44_v58 = vld [vmem:[%s1036_s2 + $0x8] sm:$0xff]  ;;  %vm231_vm2 = vcmask 130048  }
  0x19   :  { %50 = vadd.xlane.f32.xlu0 %v49_v6  ;;  %56 = vadd.xlane.f32.xlu1 %v55_v7 }
  0x1d   :  { %62 = vadd.xlane.f32.xlu1 %v61_v10  ;;  %59 = vadd.xlane.f32.xlu0 %v58_v11 }
  0x21   :  { %68 = vadd.xlane.f32.xlu1 %v67_v14  ;;  %65 = vadd.xlane.f32.xlu0 %v64_v15 }
  0xa2   :  { %v48_v16 = vpop.xlane.xlu0 %47  ;;  %v54_v17 = vpop.xlane.xlu1 %53 }
  0xa3   :  { %v71_v18 = vmul.f32 0.015625, %v48_v16  ;;  %v73_v19 = vmul.f32 0.015625, %v54_v17 }
  0xa5   :  { %v893_v20 = vsub.f32 %v860_v0, %v71_v18  ;;  %v896_v21 = vsub.f32 %v862_v1, %v73_v19 }
  0xa6   :  { %v51_v22 = vpop.xlane.xlu0 %50  ;;  %v57_v23 = vpop.xlane.xlu1 %56 }
  0xa7   :  { %v72_v24 = vmul.f32 0.015625, %v51_v22  ;;  %v74_v25 = vmul.f32 0.015625, %v57_v23  ;;  %v87_v26 = vmul.f32 %v893_v20, %v893_v20  ;;  %v89_v27 = vmul.f32 %v896_v21, %v896_v21  ;;  %v41_v22 = vld [vmem:[%s1035_s1] sm:$0xff] }
  0xa9   :  { %v903_v28 = vsub.f32 %v864_v2, %v72_v24  ;;  %v906_v29 = vsub.f32 %v870_v5, %v74_v25  ;;  %v95_v30 = vsel %vm45_vm0, %v87_v26, 0.0  ;;  %v101_v32 = vsel %vm45_vm0, %v89_v27, 0.0 }
  0xaa   :  { %96 = vadd.xlane.f32.xlu0 %v95_v30  ;;  %v63_v31 = vpop.xlane.xlu1 %62  ;;  %v60_v33 = vpop.xlane.xlu0 %59 }
  0xab   :  { %v76_v34 = vmul.f32 0.015625, %v63_v31  ;;  %v88_v35 = vmul.f32 %v903_v28, %v903_v28  ;;  %v90_v36 = vmul.f32 %v906_v29, %v906_v29  ;;  %v75_v37 = vmul.f32 0.015625, %v60_v33  ;;  %v42_v31 = vld [vmem:[%s1035_s1 + $0x8] sm:$0xff] }
  0xad   :  { %v915_v38 = vsub.f32 %v876_v8, %v76_v34  ;;  %v98_v39 = vsel %vm45_vm0, %v88_v35, 0.0  ;;  %v919_v40 = vsub.f32 %v878_v9, %v75_v37  ;;  %v104_v42 = vsel %vm45_vm0, %v90_v36, 0.0 }
  0xae   :  { %99 = vadd.xlane.f32.xlu1 %v98_v39  ;;  %v69_v41 = vpop.xlane.xlu1 %68  ;;  %102 = vadd.xlane.f32.xlu0 %v101_v32  ;;  %v66_v43 = vpop.xlane.xlu0 %65 }
  0xaf   :  { %v78_v44 = vmul.f32 0.015625, %v69_v41  ;;  %v92_v45 = vmul.f32 %v915_v38, %v915_v38  ;;  %v91_v46 = vmul.f32 %v919_v40, %v919_v40  ;;  %v77_v47 = vmul.f32 0.015625, %v66_v43 }
  0xb1   :  { %v927_v48 = vsub.f32 %v884_v12, %v78_v44  ;;  %v107_v49 = vsel %vm45_vm0, %v91_v46, 0.0  ;;  %v931_v50 = vsub.f32 %v886_v13, %v77_v47  ;;  %v110_v51 = vsel %vm45_vm0, %v92_v45, 0.0 }
  0xb2   :  { %105 = vadd.xlane.f32.xlu1 %v104_v42  ;;  %108 = vadd.xlane.f32.xlu0 %v107_v49  ;;  %v817_v44 = vmov 0.0  }
  0xb3   :  { %v94_v52 = vmul.f32 %v927_v48, %v927_v48  ;;  %v93_v53 = vmul.f32 %v931_v50, %v931_v50  ;;  %676 = vmatprep.subr.bf16.mxu0 %v817_v44  ;;  %682 = vmatprep.subr.bf16.mxu1 %v817_v44 }
  0xb4   :  { %678 = vmatprep.mubr.msk.bf16.mxu0 %vm818_vm1, %v817_v44  ;;  %684 = vmatprep.mubr.msk.bf16.mxu1 %vm818_vm1, %v817_v44 }
  0xb5   :  { %v113_v54 = vsel %vm45_vm0, %v93_v53, 0.0  ;;  %v116_v55 = vsel %vm45_vm0, %v94_v52, 0.0 }
  0xb6   :  { %111 = vadd.xlane.f32.xlu1 %v110_v51  ;;  %114 = vadd.xlane.f32.xlu0 %v113_v54 }
  0xba   :  { %117 = vadd.xlane.f32.xlu1 %v116_v55 }
  0xcb   :  { %201 = vperm.xlu1 %732, %v43_v57  }
  0xcf   :  { %206 = vperm.xlu1 %732, %v44_v58  }
 0x137   :  { %v97_v59 = vpop.xlane.xlu0 %96 }
 0x138   :  { %v119_v60 = vmul.f32 0.015625, %v97_v59 }
 0x13a   :  { %v127_v61 = vadd.f32 0.001, %v119_v60 }
 0x13b   :  { %v100_v62 = vpop.xlane.xlu1 %99  ;;  %v103_v63 = vpop.xlane.xlu0 %102 }
 0x13c   :  { %733 = vrsqrt.f32 %v127_v61  ;;  %v120_v3 = vmul.f32 0.015625, %v100_v62  ;;  %v121_v4 = vmul.f32 0.015625, %v103_v63 }
 0x13e   :  { %v128_v6 = vadd.f32 0.001, %v120_v3  ;;  %v129_v7 = vadd.f32 0.001, %v121_v4 }
 0x13f   :  { %v106_v10 = vpop.xlane.xlu1 %105  ;;  %v109_v11 = vpop.xlane.xlu0 %108 }
 0x140   :  { %735 = vrsqrt.f32 %v128_v6  ;;  %v122_v14 = vmul.f32 0.015625, %v106_v10  ;;  %v123_v15 = vmul.f32 0.015625, %v109_v11  ;;  %v225_v6 = vld [vmem:[%s1037_s3] sm:$0xff]  ;;  %s819_s3 = smov [#allocation5]  }
 0x141   :  { %737 = vrsqrt.f32 %v129_v7  ;;  %v226_v11 = vpack.c.bf16 %v225_v6, %v225_v6  ;;  %s640_s10 = sshll.u32 %s819_s3, 4  ;;  %s641_s10 = int_to_ptr.vmem [resolvable:$true] %s640_s10 }
 0x142   :  { %v130_v16 = vadd.f32 0.001, %v122_v14  ;;  %v131_v19 = vadd.f32 0.001, %v123_v15  ;;  %s787_s11 = scalar_lea.vmem %s641_s10, 512  ;;  %p792_p9 = scmp.lt.s32.totalorder %s641_s10, %s641_s10 }
 0x143   :  { %v112_v17 = vpop.xlane.xlu1 %111  ;;  %v115_v23 = vpop.xlane.xlu0 %114  ;;  %p788_p8 = scmp.ne.s32.totalorder %s641_s10, %s787_s11  ;;  %p793_p10 = scmp.lt.s32.totalorder %s787_s11, %s787_s11 }
 0x144   :  { %739 = vrsqrt.f32 %v130_v16  ;;  %v124_v18 = vmul.f32 0.015625, %v112_v17  ;;  %v125_v32 = vmul.f32 0.015625, %v115_v23 }
 0x145   :  { %741 = vrsqrt.f32 %v131_v19  ;;  %p794_p11 = por %p793_p10, %p792_p9 }
 0x146   :  { %v734_v24 = vpop.eup %733  ;;  %v132_v25 = vadd.f32 0.001, %v124_v18  ;;  %v133_v37 = vadd.f32 0.001, %v125_v32 }
 0x147   :  { %v118_v26 = vpop.xlane.xlu1 %117  ;;  %v143_v27 = vmul.f32 %v734_v24, %v41_v22  ;;  %p795_p12 = pnand %p794_p11, %p788_p8 }
 0x148   :  { %v126_v30 = vmul.f32 0.015625, %v118_v26  ;;  %743 = vrsqrt.f32 %v132_v25 }
 0x149   :  { %153 = vperm.xlu0 %731, %v143_v27  }
 0x14a   :  { %v736_v33 = vpop.eup %735  ;;  %v134_v34 = vadd.f32 0.001, %v126_v30 }
 0x14b   :  { %v738_v35 = vpop.eup %737  ;;  %v144_v36 = vmul.f32 %v736_v33, %v42_v31  ;;  %v202_v54 = vpop.permute.xlu1 %201 }
 0x14c   :  { %745 = vrsqrt.f32 %v134_v34  ;;  %v145_v39 = vmul.f32 %v738_v35, %v41_v22 }
 0x14d   :  { %158 = vperm.xlu1 %732, %v144_v36   ;;  %747 = vrsqrt.f32 %v133_v37 }
 0x14e   :  { %v740_v41 = vpop.eup %739 }
 0x14f   :  { %v146_v42 = vmul.f32 %v740_v41, %v42_v31  ;;  %v742_v43 = vpop.eup %741  ;;  %v207_v55 = vpop.permute.xlu1 %206 }
 0x150   :  { %v147_v46 = vmul.f32 %v742_v43, %v41_v22 }
 0x151   :  { %163 = vperm.xlu1 %732, %v145_v39  }
 0x152   :  { %v744_v45 = vpop.eup %743 }
 0x153   :  { %v148_v51 = vmul.f32 %v744_v45, %v42_v31 }
 0x155   :  { %168 = vperm.xlu1 %732, %v146_v42  }
 0x156   :  { %v746_v47 = vpop.eup %745 }
 0x157   :  { %v150_v49 = vmul.f32 %v746_v47, %v42_v31  ;;  %v748_v52 = vpop.eup %747 }
 0x158   :  { %v149_v53 = vmul.f32 %v748_v52, %v41_v22 }
 0x159   :  { %188 = vperm.xlu0 %731, %v150_v49   ;;  %173 = vperm.xlu1 %732, %v147_v46  }
 0x15d   :  { %178 = vperm.xlu1 %732, %v148_v51  }
 0x161   :  { %183 = vperm.xlu1 %732, %v149_v53  }
 0x1c8   :  { %v154_v56 = vpop.permute.xlu0 %153 }
 0x1c9   :  { %v191_v57 = vmul.f32 %v154_v56, %v893_v20 }
 0x1cb   :  { %v209_v59 = vadd.f32 %v202_v54, %v191_v57 }
 0x1cc   :  { %v159_v58 = vpop.permute.xlu1 %158 }
 0x1cd   :  { %v192_v60 = vmul.f32 %v159_v58, %v903_v28  ;;  %v217_v63 = vmax.f32 %v209_v59, 0.0 }
 0x1cf   :  { %v210_v61 = vadd.f32 %v207_v55, %v192_v60 }
 0x1d0   :  { %v164_v62 = vpop.permute.xlu1 %163 }
 0x1d1   :  { %v218_v3 = vmax.f32 %v210_v61, 0.0  ;;  %v193_v4 = vmul.f32 %v164_v62, %v896_v21 }
 0x1d3   :  { %v227_v7 = vpack.c.bf16 %v218_v3, %v217_v63  ;;  %v211_v14 = vadd.f32 %v202_v54, %v193_v4 }
 0x1d4   :  { %v169_v10 = vpop.permute.xlu1 %168 }
 0x1d5   :  { %v194_v20 = vmul.f32 %v169_v10, %v906_v29  ;;  %677 = vmatpush3.bf16.msra.mxu0 %v227_v7  ;;  %v219_v16 = vmax.f32 %v211_v14, 0.0 }
 0x1d6   :  { %688 = vmatprep.subr.bf16.mxu0 %v817_v44 }
 0x1d7   :  { %v212_v28 = vadd.f32 %v207_v55, %v194_v20 }
 0x1d8   :  { %v174_v15 = vpop.permute.xlu1 %173  ;;  %679 = vmatmul.mubr.msk.bf16.vlgmr.msra.gmra.mrb[0].mxu0 %vm231_vm2, %v226_v11  ;;  %v189_v18 = vpop.permute.xlu0 %188 }
 0x1d9   :  { %v220_v21 = vmax.f32 %v212_v28, 0.0  ;;  %v195_v17 = vmul.f32 %v174_v15, %v919_v40  ;;  %690 = vmatprep.mubr.msk.bf16.mxu0 %vm818_vm1, %v817_v44  ;;  %v198_v29 = vmul.f32 %v189_v18, %v927_v48  ;;  %v443_v18 = vpack.c.bf16 %v864_v2, %v860_v0 }
 0x1da   :  { %v445_v2 = vpack.c.bf16 %v876_v8, %v878_v9 }
 0x1db   :  { %v228_v19 = vpack.c.bf16 %v220_v21, %v219_v16  ;;  %v213_v23 = vadd.f32 %v202_v54, %v195_v17  ;;  %v216_v40 = vadd.f32 %v207_v55, %v198_v29  ;;  %v444_v29 = vpack.c.bf16 %v870_v5, %v862_v1 }
 0x1dc   :  { %v179_v22 = vpop.permute.xlu1 %178  ;;  %v446_v5 = vpack.c.bf16 %v884_v12, %v886_v13 }
 0x1dd   :  { %v196_v24 = vmul.f32 %v179_v22, %v915_v38  ;;  %683 = vmatpush3.bf16.msra.mxu1 %v228_v19  ;;  %v221_v27 = vmax.f32 %v213_v23, 0.0  ;;  %v224_v48 = vmax.f32 %v216_v40, 0.0  ;;  %v451_v23 = vsel %vm45_vm0, %v443_v18, 0 }
 0x1de   :  { %694 = vmatprep.subr.bf16.mxu1 %v817_v44  ;;  %v589_v9 = vsel %vm45_vm0, %v446_v5, 0 }
 0x1df   :  { %v214_v25 = vadd.f32 %v207_v55, %v196_v24  ;;  %v497_v24 = vsel %vm45_vm0, %v444_v29, 0 }
 0x1e0   :  { %685 = vmatmul.mubr.msk.bf16.vlgmr.msra.gmra.mrb[0].mxu1 %vm231_vm2, %v226_v11  ;;  %v184_v26 = vpop.permute.xlu1 %183 }
 0x1e1   :  { %v222_v30 = vmax.f32 %v214_v25, 0.0  ;;  %v197_v31 = vmul.f32 %v184_v26, %v931_v50  ;;  %696 = vmatprep.mubr.msk.bf16.mxu1 %vm818_vm1, %v817_v44 }
 0x1e3   :  { %v229_v32 = vpack.c.bf16 %v222_v30, %v221_v27  ;;  %v215_v33 = vadd.f32 %v202_v54, %v197_v31  ;;  %v543_v30 = vsel %vm45_vm0, %v445_v2, 0 }
 0x1e5   :  { %v223_v34 = vmax.f32 %v215_v33, 0.0  ;;  %689 = vmatpush3.bf16.msra.mxu0 %v229_v32 }
 0x1e6   :  { %700 = vmatprep.subr.bf16.mxu0 %v817_v44 }
 0x1e7   :  { %v230_v38 = vpack.c.bf16 %v224_v48, %v223_v34 }
 0x1e8   :  { %691 = vmatmul.mubr.msk.bf16.vlgmr.msra.gmra.mrb[4].mxu0 %vm231_vm2, %v226_v11 }
 0x1e9   :  { %695 = vmatpush3.bf16.msra.mxu1 %v230_v38  ;;  %702 = vmatprep.mubr.msk.bf16.mxu0 %vm818_vm1, %v817_v44 }
 0x1ea   :  { %706 = vmatprep.subr.bf16.mxu1 %v817_v44 }
 0x1ec   :  { %697 = vmatmul.mubr.msk.bf16.vlgmr.msra.gmra.mrb[4].mxu1 %vm231_vm2, %v226_v11 }
 0x1ed   :  { %708 = vmatprep.mubr.msk.bf16.mxu1 %vm818_vm1, %v817_v44 }
 0x1ee   :  { %701 = vmatpush3.bf16.xpose.msra.mxu0 %v451_v23 }
 0x1ef   :  { %712 = vmatprep.subr.bf16.mxu0 %v817_v44 }
 0x1f2   :  { %707 = vmatpush3.bf16.xpose.msra.mxu1 %v497_v24 }
 0x1f3   :  { %718 = vmatprep.subr.bf16.mxu1 %v817_v44 }
 0x2ab   :  { %v269_v50 = vpop.f32.mrb[0].mxu0 }
 0x2ac   :  { %v395_v35 = vsel %vm45_vm0, %v269_v50, -inf  ;;  %v680_v36 = vpop.f32.mrb[1].mxu0 }
 0x2ad   :  { %396 = vmax.xlane.f32.xlu1 %v395_v35  ;;  %v272_v37 = vpop.f32.mrb[2].mxu0 }
 0x2ae   :  { %v681_v39 = vpop.f32.mrb[3].mxu0 }
 0x2b3   :  { %v309_v41 = vpop.f32.mrb[0].mxu1 }
 0x2b4   :  { %v398_v42 = vsel %vm45_vm0, %v309_v41, -inf  ;;  %v686_v43 = vpop.f32.mrb[1].mxu1 }
 0x2b5   :  { %399 = vmax.xlane.f32.xlu0 %v398_v42  ;;  %v312_v45 = vpop.f32.mrb[2].mxu1 }
 0x2b6   :  { %v687_v46 = vpop.f32.mrb[3].mxu1 }
 0x2bb   :  { %v349_v47 = vpop.f32.mrb[4].mxu0 }
 0x2bc   :  { %v401_v49 = vsel %vm45_vm0, %v349_v47, -inf  ;;  %v692_v51 = vpop.f32.mrb[5].mxu0 }
 0x2bd   :  { %402 = vmax.xlane.f32.xlu0 %v401_v49  ;;  %v352_v52 = vpop.f32.mrb[6].mxu0 }
 0x2be   :  { %v693_v53 = vpop.f32.mrb[7].mxu0 }
 0x2bf   :  { %v389_v54 = vpop.f32.mrb[4].mxu1 }
 0x2c0   :  { %v404_v55 = vsel %vm45_vm0, %v389_v54, -inf  ;;  %v698_v56 = vpop.f32.mrb[5].mxu1 }
 0x2c1   :  { %405 = vmax.xlane.f32.xlu1 %v404_v55  ;;  %v392_v57 = vpop.f32.mrb[6].mxu1 }
 0x2c2   :  { %v699_v58 = vpop.f32.mrb[7].mxu1 }
 0x33a   :  { %v397_v59 = vpop.xlane.xlu1 %396 }
 0x33b   :  { %v407_v60 = vsub.f32 %v269_v50, %v397_v59 }
 0x33d   :  { %v411_v61 = vmul.f32 1.442695, %v407_v60 }
 0x33f   :  { %749 = vpow2.f32 %v411_v61 }
 0x342   :  { %v400_v62 = vpop.xlane.xlu0 %399 }
 0x343   :  { %v408_v63 = vsub.f32 %v309_v41, %v400_v62 }
 0x345   :  { %v413_v3 = vmul.f32 1.442695, %v408_v63 }
 0x347   :  { %751 = vpow2.f32 %v413_v3 }
 0x349   :  { %v750_v4 = vpop.eup %749 }
 0x34a   :  { %v403_v6 = vpop.xlane.xlu0 %402  ;;  %v419_v7 = vsel %vm45_vm0, %v750_v4, 0.0 }
 0x34b   :  { %v409_v10 = vsub.f32 %v349_v47, %v403_v6  ;;  %420 = vadd.xlane.f32.xlu0 %v419_v7 }
 0x34d   :  { %v415_v11 = vmul.f32 1.442695, %v409_v10 }
 0x34e   :  { %v406_v14 = vpop.xlane.xlu1 %405 }
 0x34f   :  { %753 = vpow2.f32 %v415_v11  ;;  %v410_v20 = vsub.f32 %v389_v54, %v406_v14 }
 0x351   :  { %v752_v28 = vpop.eup %751  ;;  %v417_v15 = vmul.f32 1.442695, %v410_v20 }
 0x352   :  { %v422_v16 = vsel %vm45_vm0, %v752_v28, 0.0 }
 0x353   :  { %755 = vpow2.f32 %v417_v15  ;;  %423 = vadd.xlane.f32.xlu1 %v422_v16 }
 0x359   :  { %v754_v21 = vpop.eup %753 }
 0x35a   :  { %v425_v17 = vsel %vm45_vm0, %v754_v21, 0.0 }
 0x35b   :  { %426 = vadd.xlane.f32.xlu0 %v425_v17 }
 0x35d   :  { %v756_v19 = vpop.eup %755 }
 0x35e   :  { %v428_v22 = vsel %vm45_vm0, %v756_v19, 0.0 }
 0x35f   :  { %429 = vadd.xlane.f32.xlu1 %v428_v22 }
 0x3d8   :  { %v421_v25 = vpop.xlane.xlu0 %420 }
 0x3d9   :  { %757 = vrcp.f32 %v421_v25 }
 0x3e0   :  { %v424_v0 = vpop.xlane.xlu1 %423 }
 0x3e1   :  { %759 = vrcp.f32 %v424_v0 }
 0x3e3   :  { %v758_v26 = vpop.eup %757 }
 0x3e4   :  { %v435_v27 = vmul.f32 %v758_v26, %v750_v4 }
 0x3e6   :  { %v439_v40 = vpack.c.bf16 %v435_v27, %v435_v27 }
 0x3e8   :  { %703 = vmatmul.mubr.msk.bf16.vlgmr.msra.gmra.mrb[8].mxu0 %vm45_vm0, %v439_v40  ;;  %v427_v1 = vpop.xlane.xlu0 %426 }
 0x3e9   :  { %761 = vrcp.f32 %v427_v1  ;;  %713 = vmatpush3.bf16.xpose.msra.mxu0 %v543_v30  ;;  %714 = vmatprep.mubr.msk.bf16.mxu0 %vm818_vm1, %v817_v44 }
 0x3eb   :  { %v760_v31 = vpop.eup %759 }
 0x3ec   :  { %v436_v32 = vmul.f32 %v760_v31, %v752_v28  ;;  %v430_v33 = vpop.xlane.xlu1 %429 }
 0x3ed   :  { %763 = vrcp.f32 %v430_v33 }
 0x3ee   :  { %v440_v8 = vpack.c.bf16 %v436_v32, %v436_v32 }
 0x3f0   :  { %709 = vmatmul.mubr.msk.bf16.vlgmr.msra.gmra.mrb[8].mxu1 %vm45_vm0, %v440_v8 }
 0x3f1   :  { %719 = vmatpush3.bf16.xpose.msra.mxu1 %v589_v9  ;;  %720 = vmatprep.mubr.msk.bf16.mxu1 %vm818_vm1, %v817_v44 }
 0x3f3   :  { %v762_v48 = vpop.eup %761 }
 0x3f4   :  { %v437_v34 = vmul.f32 %v762_v48, %v754_v21 }
 0x3f6   :  { %v441_v38 = vpack.c.bf16 %v437_v34, %v437_v34 }
 0x3f7   :  { %v764_v50 = vpop.eup %763 }
 0x3f8   :  { %v438_v35 = vmul.f32 %v764_v50, %v756_v19  ;;  %715 = vmatmul.mubr.msk.bf16.vlgmr.msra.gmra.mrb[12].mxu0 %vm45_vm0, %v441_v38 }
 0x3fa   :  { %v442_v12 = vpack.c.bf16 %v438_v35, %v438_v35 }
 0x3fc   :  { %721 = vmatmul.mubr.msk.bf16.vlgmr.msra.gmra.mrb[12].mxu1 %vm45_vm0, %v442_v12 }
 0x4bb   :  { %v487_v13 = vpop.f32.mrb[8].mxu0 }
 0x4bc   :  { %631 = vst.msk [vmem:[#allocation5] sm:$0xff] %vm231_vm2, %v487_v13  ;;  %v704_v36 = vpop.f32.mrb[9].mxu0 }
 0x4bd   :  { %v490_v37 = vpop.f32.mrb[10].mxu0 }
 0x4be   :  { %v705_v39 = vpop.f32.mrb[11].mxu0 }
 0x4c3   :  { %v533_v41 = vpop.f32.mrb[8].mxu1 }
 0x4c4   :  { %632 = vst.msk [vmem:[#allocation5 + $0x8] sm:$0xff] %vm231_vm2, %v533_v41  ;;  %v710_v44 = vpop.f32.mrb[9].mxu1 }
 0x4c5   :  { %v536_v42 = vpop.f32.mrb[10].mxu1 }
 0x4c6   :  { %v711_v43 = vpop.f32.mrb[11].mxu1 }
 0x4cb   :  { %v579_v45 = vpop.f32.mrb[12].mxu0 }
 0x4cc   :  { %633 = vst.msk [vmem:[#allocation5 + $0x10] sm:$0xff] %vm231_vm2, %v579_v45  ;;  %v716_v46 = vpop.f32.mrb[13].mxu0 }
 0x4cd   :  { %v582_v47 = vpop.f32.mrb[14].mxu0 }
 0x4ce   :  { %v717_v49 = vpop.f32.mrb[15].mxu0 }
 0x4cf   :  { %v625_v51 = vpop.f32.mrb[12].mxu1 }
 0x4d0   :  { %634 = vst.msk [vmem:[#allocation5 + $0x18] sm:$0xff] %vm231_vm2, %v625_v51  ;;  %v722_v52 = vpop.f32.mrb[13].mxu1 }
 0x4d1   :  { %v628_v53 = vpop.f32.mrb[14].mxu1 }
 0x4d2   :  { %798 = shalt.err (!%p795_p12)
}
 0x4d3   :  { %s799_s14 = scalar_lea.hbm %s1038_s4, 512 }
 0x4d4   :  { %p800_p13 = scmp.ne.s32.totalorder %s1038_s4, %s799_s14  ;;  %p803_p0 = scmp.lt.u32.totalorder %s799_s14, %s1038_s4 }
 0x4d6   :  { %p805_p1 = pnand %p803_p0, %p800_p13 }
 0x4d8   :  { %808 = shalt.err (!%p805_p1)
}
 0x4d9   :  { %646 = dma.vmem_to_hbm [thread:$0]  %s641_s10, 512, %s1038_s4, [#allocation4], %s814_s25, %s814_s25, %s815_s26   ;;  %v723_v54 = vpop.f32.mrb[15].mxu1 }
 0x4da   :  { %811 = dma.done.wait [#allocation4], 512  }
 0x4db   :  { %812 = vsyncadd [#allocation4], 4294966784 }
 0x4dc   :  { %650 = vsyncpa [#allocation3], 1 }
 0x4dd   :  { %651 = vsyncpa [#allocation4], 1 }

</bundles_post_ra>
